<compile_context>
chip_gen: v5e
topology: v5e:2x2
jax: 0.10.0
libtpu: 0.0.40
codegen_flags: <defaults>
</compile_context>

<pallas_src>
import functools
import math

import jax
import jax.numpy as jnp
from jax.experimental import pallas as pl
from jax.experimental.pallas import tpu as pltpu


def _round_up(x, m):
    return (x + m - 1) // m * m


def _local_gru_kernel(halo_ref, tile_ref, wih_ref, whh_ref, bi_ref, bhn_ref,
                      o_ref, *, window):
    """One (batch x seq-tile) grid step.

    halo_ref : (1, HP, D)  the (W-1) rows preceding this tile, front-padded
                           with zeros up to HP (a multiple of 8)
    tile_ref : (1, TS, D)  this tile's input rows
    wih_ref  : (D, 3H)  fused input->hidden weights, gate order [r | z | n]
    whh_ref  : (H, 3H)  fused hidden->hidden weights, gate order [r | z | n]
    bi_ref   : (1, 3H)  fused biases  [bir+bhr | biz+bhz | bin]
    bhn_ref  : (1, H)   recurrent "new" gate bias (kept separate: inside r*( ))
    o_ref    : (TS, H)  last hidden state for each of the TS positions
    """
    ts, hd = o_ref.shape
    hp = halo_ref.shape[1]

    halo = halo_ref[0].astype(jnp.float32)           # (HP, D)
    tile = tile_ref[0].astype(jnp.float32)           # (TS, D)
    wih = wih_ref[...].astype(jnp.float32)           # (D, 3H)
    whh = whh_ref[...].astype(jnp.float32)           # (H, 3H)
    bi = bi_ref[...].astype(jnp.float32)             # (1, 3H)
    bhn = bhn_ref[...].astype(jnp.float32)           # (1, H)

    # Both pieces are sublane-aligned (HP and TS are multiples of 8).
    slab = jnp.concatenate([halo, tile], axis=0)     # (HP+TS, D)

    # Hoisted input projection: one large MXU matmul for the whole slab,
    # biases folded in (computed once, reused by every window step below).
    gi_all = jnp.dot(slab, wih, preferred_element_type=jnp.float32) + bi

    # Serialized part: only h @ Whh_fused per window step + gate math.
    off0 = hp - (window - 1)                         # >= 0, static
    h = jnp.zeros((ts, hd), jnp.float32)
    for t in range(window):  # window_size is small and static -> unrolled
        gi = gi_all[off0 + t: off0 + t + ts, :]      # static shifted slice
        gh = jnp.dot(h, whh, preferred_element_type=jnp.float32)
        r = jax.nn.sigmoid(gi[:, :hd] + gh[:, :hd])
        z = jax.nn.sigmoid(gi[:, hd:2 * hd] + gh[:, hd:2 * hd])
        n = jnp.tanh(gi[:, 2 * hd:] + r * (gh[:, 2 * hd:] + bhn))
        h = (1.0 - z) * n + z * h

    o_ref[...] = h.astype(o_ref.dtype)


def local_rnn_forward(x, params, window_size, tile_seq=256):
    """LocalRNN.forward.  x: (B, S, D) -> (B, S, D)."""
    b, s, d = x.shape
    w = window_size
    hdim = d

    # Sequence tile: multiple of 8 sublanes, at most tile_seq.
    ts = min(_round_up(tile_seq, 8), _round_up(s, 8))
    s_pad = _round_up(s, ts)
    nt = s_pad // ts

    # Main tiles: right-pad to a tile multiple; pure pad + reshape (no gather,
    # no duplicated staging copy of x).
    x_tiles = jnp.pad(x, ((0, 0), (0, s_pad - s), (0, 0))).reshape(b * nt, ts, d)

    # Tiny halo tensor: the (W-1) rows preceding each tile (zeros for the
    # first tile), front-padded with zeros to HP (multiple of 8 sublanes).
    wh = w - 1
    hp = max(8, _round_up(wh, 8))
    x_lp = jnp.concatenate([jnp.zeros((b, wh, d), x.dtype), x], axis=1)
    halo = jnp.stack(
        [x_lp[:, j * ts: j * ts + wh, :] for j in range(nt)], axis=1
    )                                                       # (B, nt, W-1, D)
    halo = jnp.pad(halo, ((0, 0), (0, 0), (hp - wh, 0), (0, 0)))
    halo = halo.reshape(b * nt, hp, d)                      # (B*nt, HP, D)

    # Fuse gate weights / fold biases (gate order r, z, n as in PyTorch GRU).
    wih, whh, bih, bhh = params["wih"], params["whh"], params["bih"], params["bhh"]
    wih_f = jnp.concatenate([wih[0], wih[1], wih[2]], axis=1)               # (D, 3H)
    whh_f = jnp.concatenate([whh[0], whh[1], whh[2]], axis=1)               # (H, 3H)
    bi_f = jnp.concatenate([bih[0] + bhh[0], bih[1] + bhh[1], bih[2]],
                           axis=1)                                          # (1, 3H)
    bhn = bhh[2]                                                            # (1, H)

    out = pl.pallas_call(
        functools.partial(_local_gru_kernel, window=w),
        out_shape=jax.ShapeDtypeStruct((b * nt * ts, hdim), x.dtype),
        grid_spec=pltpu.PrefetchScalarGridSpec(
            num_scalar_prefetch=0,
            grid=(b * nt,),
            in_specs=[
                pl.BlockSpec((1, hp, d), lambda i: (i, 0, 0)),
                pl.BlockSpec((1, ts, d), lambda i: (i, 0, 0)),
                pl.BlockSpec((d, 3 * hdim), lambda i: (0, 0)),
                pl.BlockSpec((hdim, 3 * hdim), lambda i: (0, 0)),
                pl.BlockSpec((1, 3 * hdim), lambda i: (0, 0)),
                pl.BlockSpec((1, hdim), lambda i: (0, 0)),
            ],
            out_specs=pl.BlockSpec((ts, hdim), lambda i: (i, 0)),
        ),
        compiler_params=pltpu.CompilerParams(
            dimension_semantics=("parallel",),
        ),
    )(halo, x_tiles, wih_f, whh_f, bi_f, bhn)

    return out.reshape(b, s_pad, d)[:, :s, :]


def init_params(key, d_model):
    """Deterministic GRU params (PyTorch-style uniform(-1/sqrt(H), 1/sqrt(H)))."""
    h = d_model
    std = 1.0 / math.sqrt(h)
    k1, k2, k3, k4 = jax.random.split(key, 4)
    return {
        # gate order: reset, update, new (same as PyTorch GRU: r, z, n)
        "wih": jax.random.uniform(k1, (3, d_model, h), jnp.float32, -std, std),
        "whh": jax.random.uniform(k2, (3, h, h), jnp.float32, -std, std),
        "bih": jax.random.uniform(k3, (3, 1, h), jnp.float32, -std, std),
        "bhh": jax.random.uniform(k4, (3, 1, h), jnp.float32, -std, std),
    }


def _reference_forward(x, params, window_size):
    """Pure-JAX reference of the same forward pass (gather formulation)."""
    b, s, d = x.shape
    w = window_size
    zeros = jnp.zeros((b, w - 1, d), x.dtype)
    x_pad = jnp.concatenate([zeros, x], axis=1)
    idx = jnp.asarray(
        [i for j in range(w - 1, w - 1 + s) for i in range(j - (w - 1), j + 1)],
        dtype=jnp.int32,
    )
    x_seg = x_pad[:, idx, :].reshape(b * s, w, d)
    wih, whh, bih, bhh = params["wih"], params["whh"], params["bih"], params["bhh"]
    h = jnp.zeros((x_seg.shape[0], d), jnp.float32)
    for t in range(w):
        xt = x_seg[:, t, :].astype(jnp.float32)
        r = jax.nn.sigmoid(xt @ wih[0] + bih[0] + h @ whh[0] + bhh[0])
        z = jax.nn.sigmoid(xt @ wih[1] + bih[1] + h @ whh[1] + bhh[1])
        n = jnp.tanh(xt @ wih[2] + bih[2] + r * (h @ whh[2] + bhh[2]))
        h = (1.0 - z) * n + z * h
    return h.reshape(b, s, d)


if __name__ == "__main__":
    # small shapes: batch=2, seq=8, d_model=32, window_size=4
    B, S, D, WIN = 2, 8, 32, 4

    key = jax.random.PRNGKey(0)
    kx, kp = jax.random.split(key)
    x = jax.random.normal(kx, (B, S, D), jnp.float32)
    params = init_params(kp, D)

    fwd = jax.jit(lambda xx, pp: local_rnn_forward(xx, pp, window_size=WIN))
    out = fwd(x, params)
    out = jax.block_until_ready(out)

    ref = _reference_forward(x, params, WIN)
    assert out.shape == (B, S, D)
    assert jnp.allclose(out, ref, atol=1e-4, rtol=1e-4), "mismatch vs reference"

    print("KERNEL_OK")
</pallas_src>

<mosaic_0001>
module attributes {stable_mosaic.version = 11 : i64} {
  func.func @_local_gru_kernel(%arg0: i32, %arg1: memref<1x8x32xf32, #tpu.memory_space<vmem>>, %arg2: memref<1x8x32xf32, #tpu.memory_space<vmem>>, %arg3: memref<32x96xf32, #tpu.memory_space<vmem>>, %arg4: memref<32x96xf32, #tpu.memory_space<vmem>>, %arg5: memref<1x96xf32, #tpu.memory_space<vmem>>, %arg6: memref<1x32xf32, #tpu.memory_space<vmem>>, %arg7: memref<8x32xf32, #tpu.memory_space<vmem>>) attributes {dimension_semantics = [#tpu.dimension_semantics<parallel>], iteration_bounds = array<i64: 2>, scalar_prefetch = 0 : i64, scratch_operands = 0 : i64, tpu.core_type = #tpu.core_type<tc>, window_params = [{transform_indices = @transform_0, window_bounds = array<i64: 1, 8, 32>}, {transform_indices = @transform_1, window_bounds = array<i64: 1, 8, 32>}, {pipeline_mode = #tpu.pipeline_mode<synchronous>, transform_indices = @transform_2, window_bounds = array<i64: 32, 96>}, {pipeline_mode = #tpu.pipeline_mode<synchronous>, transform_indices = @transform_3, window_bounds = array<i64: 32, 96>}, {pipeline_mode = #tpu.pipeline_mode<synchronous>, transform_indices = @transform_4, window_bounds = array<i64: 1, 96>}, {pipeline_mode = #tpu.pipeline_mode<synchronous>, transform_indices = @transform_5, window_bounds = array<i64: 1, 32>}, {transform_indices = @transform_6, window_bounds = array<i64: 8, 32>}]} {
    %c0 = arith.constant 0 : index
    %c0_0 = arith.constant 0 : index
    %c0_1 = arith.constant 0 : index
    %0 = vector.load %arg1[%c0, %c0_0, %c0_1] : memref<1x8x32xf32, #tpu.memory_space<vmem>>, vector<1x8x32xf32>
    %1 = vector.shape_cast %0 : vector<1x8x32xf32> to vector<8x32xf32>
    %c0_2 = arith.constant 0 : index
    %c0_3 = arith.constant 0 : index
    %c0_4 = arith.constant 0 : index
    %2 = vector.load %arg2[%c0_2, %c0_3, %c0_4] : memref<1x8x32xf32, #tpu.memory_space<vmem>>, vector<1x8x32xf32>
    %3 = vector.shape_cast %2 : vector<1x8x32xf32> to vector<8x32xf32>
    %c0_5 = arith.constant 0 : index
    %c0_6 = arith.constant 0 : index
    %4 = vector.load %arg3[%c0_5, %c0_6] : memref<32x96xf32, #tpu.memory_space<vmem>>, vector<32x96xf32>
    %c0_7 = arith.constant 0 : index
    %c0_8 = arith.constant 0 : index
    %5 = vector.load %arg4[%c0_7, %c0_8] : memref<32x96xf32, #tpu.memory_space<vmem>>, vector<32x96xf32>
    %c0_9 = arith.constant 0 : index
    %c0_10 = arith.constant 0 : index
    %6 = vector.load %arg5[%c0_9, %c0_10] : memref<1x96xf32, #tpu.memory_space<vmem>>, vector<1x96xf32>
    %c0_11 = arith.constant 0 : index
    %c0_12 = arith.constant 0 : index
    %7 = vector.load %arg6[%c0_11, %c0_12] : memref<1x32xf32, #tpu.memory_space<vmem>>, vector<1x32xf32>
    %8 = tpu.concatenate %1, %3 in 0 : vector<8x32xf32>, vector<8x32xf32> -> vector<16x32xf32>
    %cst = arith.constant dense<0.000000e+00> : vector<16x96xf32>
    %9 = tpu.matmul %8, %4, %cst {dimension_numbers = #tpu.dot_dimension_numbers<[1], [0], [0], [1], [0, 0, 1, 1], [], []>} : vector<16x32xf32>, vector<32x96xf32>, vector<16x96xf32> -> vector<16x96xf32>
    %10 = vector.broadcast %6 : vector<1x96xf32> to vector<16x96xf32>
    %11 = arith.addf %9, %10 : vector<16x96xf32>
    %cst_13 = arith.constant 0.000000e+00 : f32
    %12 = vector.broadcast %cst_13 : f32 to vector<8x32xf32>
    %13 = vector.extract_strided_slice %11 {offsets = [5, 0], sizes = [8, 96], strides = [1, 1]} : vector<16x96xf32> to vector<8x96xf32>
    %cst_14 = arith.constant dense<0.000000e+00> : vector<8x96xf32>
    %14 = tpu.matmul %12, %5, %cst_14 {dimension_numbers = #tpu.dot_dimension_numbers<[1], [0], [0], [1], [0, 0, 1, 1], [], []>} : vector<8x32xf32>, vector<32x96xf32>, vector<8x96xf32> -> vector<8x96xf32>
    %15 = vector.extract_strided_slice %13 {offsets = [0, 0], sizes = [8, 32], strides = [1, 1]} : vector<8x96xf32> to vector<8x32xf32>
    %16 = vector.extract_strided_slice %14 {offsets = [0, 0], sizes = [8, 32], strides = [1, 1]} : vector<8x96xf32> to vector<8x32xf32>
    %17 = arith.addf %15, %16 : vector<8x32xf32>
    %18 = arith.negf %17 : vector<8x32xf32>
    %19 = math.exp %18 : vector<8x32xf32>
    %cst_15 = arith.constant 1.000000e+00 : f32
    %20 = vector.broadcast %cst_15 : f32 to vector<8x32xf32>
    %21 = arith.addf %20, %19 : vector<8x32xf32>
    %22 = arith.divf %20, %21 : vector<8x32xf32>
    %23 = vector.extract_strided_slice %13 {offsets = [0, 32], sizes = [8, 32], strides = [1, 1]} : vector<8x96xf32> to vector<8x32xf32>
    %24 = vector.extract_strided_slice %14 {offsets = [0, 32], sizes = [8, 32], strides = [1, 1]} : vector<8x96xf32> to vector<8x32xf32>
    %25 = arith.addf %23, %24 : vector<8x32xf32>
    %26 = arith.negf %25 : vector<8x32xf32>
    %27 = math.exp %26 : vector<8x32xf32>
    %cst_16 = arith.constant 1.000000e+00 : f32
    %28 = vector.broadcast %cst_16 : f32 to vector<8x32xf32>
    %29 = arith.addf %28, %27 : vector<8x32xf32>
    %30 = arith.divf %28, %29 : vector<8x32xf32>
    %31 = vector.extract_strided_slice %13 {offsets = [0, 64], sizes = [8, 32], strides = [1, 1]} : vector<8x96xf32> to vector<8x32xf32>
    %32 = vector.extract_strided_slice %14 {offsets = [0, 64], sizes = [8, 32], strides = [1, 1]} : vector<8x96xf32> to vector<8x32xf32>
    %33 = vector.broadcast %7 : vector<1x32xf32> to vector<8x32xf32>
    %34 = arith.addf %32, %33 : vector<8x32xf32>
    %35 = arith.mulf %22, %34 : vector<8x32xf32>
    %36 = arith.addf %31, %35 : vector<8x32xf32>
    %37 = math.tanh %36 : vector<8x32xf32>
    %cst_17 = arith.constant 1.000000e+00 : f32
    %38 = vector.broadcast %cst_17 : f32 to vector<8x32xf32>
    %39 = arith.subf %38, %30 : vector<8x32xf32>
    %40 = arith.mulf %39, %37 : vector<8x32xf32>
    %41 = arith.mulf %30, %12 : vector<8x32xf32>
    %42 = arith.addf %40, %41 : vector<8x32xf32>
    %43 = vector.extract_strided_slice %11 {offsets = [6, 0], sizes = [8, 96], strides = [1, 1]} : vector<16x96xf32> to vector<8x96xf32>
    %cst_18 = arith.constant dense<0.000000e+00> : vector<8x96xf32>
    %44 = tpu.matmul %42, %5, %cst_18 {dimension_numbers = #tpu.dot_dimension_numbers<[1], [0], [0], [1], [0, 0, 1, 1], [], []>} : vector<8x32xf32>, vector<32x96xf32>, vector<8x96xf32> -> vector<8x96xf32>
    %45 = vector.extract_strided_slice %43 {offsets = [0, 0], sizes = [8, 32], strides = [1, 1]} : vector<8x96xf32> to vector<8x32xf32>
    %46 = vector.extract_strided_slice %44 {offsets = [0, 0], sizes = [8, 32], strides = [1, 1]} : vector<8x96xf32> to vector<8x32xf32>
    %47 = arith.addf %45, %46 : vector<8x32xf32>
    %48 = arith.negf %47 : vector<8x32xf32>
    %49 = math.exp %48 : vector<8x32xf32>
    %cst_19 = arith.constant 1.000000e+00 : f32
    %50 = vector.broadcast %cst_19 : f32 to vector<8x32xf32>
    %51 = arith.addf %50, %49 : vector<8x32xf32>
    %52 = arith.divf %50, %51 : vector<8x32xf32>
    %53 = vector.extract_strided_slice %43 {offsets = [0, 32], sizes = [8, 32], strides = [1, 1]} : vector<8x96xf32> to vector<8x32xf32>
    %54 = vector.extract_strided_slice %44 {offsets = [0, 32], sizes = [8, 32], strides = [1, 1]} : vector<8x96xf32> to vector<8x32xf32>
    %55 = arith.addf %53, %54 : vector<8x32xf32>
    %56 = arith.negf %55 : vector<8x32xf32>
    %57 = math.exp %56 : vector<8x32xf32>
    %cst_20 = arith.constant 1.000000e+00 : f32
    %58 = vector.broadcast %cst_20 : f32 to vector<8x32xf32>
    %59 = arith.addf %58, %57 : vector<8x32xf32>
    %60 = arith.divf %58, %59 : vector<8x32xf32>
    %61 = vector.extract_strided_slice %43 {offsets = [0, 64], sizes = [8, 32], strides = [1, 1]} : vector<8x96xf32> to vector<8x32xf32>
    %62 = vector.extract_strided_slice %44 {offsets = [0, 64], sizes = [8, 32], strides = [1, 1]} : vector<8x96xf32> to vector<8x32xf32>
    %63 = vector.broadcast %7 : vector<1x32xf32> to vector<8x32xf32>
    %64 = arith.addf %62, %63 : vector<8x32xf32>
    %65 = arith.mulf %52, %64 : vector<8x32xf32>
    %66 = arith.addf %61, %65 : vector<8x32xf32>
    %67 = math.tanh %66 : vector<8x32xf32>
    %cst_21 = arith.constant 1.000000e+00 : f32
    %68 = vector.broadcast %cst_21 : f32 to vector<8x32xf32>
    %69 = arith.subf %68, %60 : vector<8x32xf32>
    %70 = arith.mulf %69, %67 : vector<8x32xf32>
    %71 = arith.mulf %60, %42 : vector<8x32xf32>
    %72 = arith.addf %70, %71 : vector<8x32xf32>
    %73 = vector.extract_strided_slice %11 {offsets = [7, 0], sizes = [8, 96], strides = [1, 1]} : vector<16x96xf32> to vector<8x96xf32>
    %cst_22 = arith.constant dense<0.000000e+00> : vector<8x96xf32>
    %74 = tpu.matmul %72, %5, %cst_22 {dimension_numbers = #tpu.dot_dimension_numbers<[1], [0], [0], [1], [0, 0, 1, 1], [], []>} : vector<8x32xf32>, vector<32x96xf32>, vector<8x96xf32> -> vector<8x96xf32>
    %75 = vector.extract_strided_slice %73 {offsets = [0, 0], sizes = [8, 32], strides = [1, 1]} : vector<8x96xf32> to vector<8x32xf32>
    %76 = vector.extract_strided_slice %74 {offsets = [0, 0], sizes = [8, 32], strides = [1, 1]} : vector<8x96xf32> to vector<8x32xf32>
    %77 = arith.addf %75, %76 : vector<8x32xf32>
    %78 = arith.negf %77 : vector<8x32xf32>
    %79 = math.exp %78 : vector<8x32xf32>
    %cst_23 = arith.constant 1.000000e+00 : f32
    %80 = vector.broadcast %cst_23 : f32 to vector<8x32xf32>
    %81 = arith.addf %80, %79 : vector<8x32xf32>
    %82 = arith.divf %80, %81 : vector<8x32xf32>
    %83 = vector.extract_strided_slice %73 {offsets = [0, 32], sizes = [8, 32], strides = [1, 1]} : vector<8x96xf32> to vector<8x32xf32>
    %84 = vector.extract_strided_slice %74 {offsets = [0, 32], sizes = [8, 32], strides = [1, 1]} : vector<8x96xf32> to vector<8x32xf32>
    %85 = arith.addf %83, %84 : vector<8x32xf32>
    %86 = arith.negf %85 : vector<8x32xf32>
    %87 = math.exp %86 : vector<8x32xf32>
    %cst_24 = arith.constant 1.000000e+00 : f32
    %88 = vector.broadcast %cst_24 : f32 to vector<8x32xf32>
    %89 = arith.addf %88, %87 : vector<8x32xf32>
    %90 = arith.divf %88, %89 : vector<8x32xf32>
    %91 = vector.extract_strided_slice %73 {offsets = [0, 64], sizes = [8, 32], strides = [1, 1]} : vector<8x96xf32> to vector<8x32xf32>
    %92 = vector.extract_strided_slice %74 {offsets = [0, 64], sizes = [8, 32], strides = [1, 1]} : vector<8x96xf32> to vector<8x32xf32>
    %93 = vector.broadcast %7 : vector<1x32xf32> to vector<8x32xf32>
    %94 = arith.addf %92, %93 : vector<8x32xf32>
    %95 = arith.mulf %82, %94 : vector<8x32xf32>
    %96 = arith.addf %91, %95 : vector<8x32xf32>
    %97 = math.tanh %96 : vector<8x32xf32>
    %cst_25 = arith.constant 1.000000e+00 : f32
    %98 = vector.broadcast %cst_25 : f32 to vector<8x32xf32>
    %99 = arith.subf %98, %90 : vector<8x32xf32>
    %100 = arith.mulf %99, %97 : vector<8x32xf32>
    %101 = arith.mulf %90, %72 : vector<8x32xf32>
    %102 = arith.addf %100, %101 : vector<8x32xf32>
    %103 = vector.extract_strided_slice %11 {offsets = [8, 0], sizes = [8, 96], strides = [1, 1]} : vector<16x96xf32> to vector<8x96xf32>
    %cst_26 = arith.constant dense<0.000000e+00> : vector<8x96xf32>
    %104 = tpu.matmul %102, %5, %cst_26 {dimension_numbers = #tpu.dot_dimension_numbers<[1], [0], [0], [1], [0, 0, 1, 1], [], []>} : vector<8x32xf32>, vector<32x96xf32>, vector<8x96xf32> -> vector<8x96xf32>
    %105 = vector.extract_strided_slice %103 {offsets = [0, 0], sizes = [8, 32], strides = [1, 1]} : vector<8x96xf32> to vector<8x32xf32>
    %106 = vector.extract_strided_slice %104 {offsets = [0, 0], sizes = [8, 32], strides = [1, 1]} : vector<8x96xf32> to vector<8x32xf32>
    %107 = arith.addf %105, %106 : vector<8x32xf32>
    %108 = arith.negf %107 : vector<8x32xf32>
    %109 = math.exp %108 : vector<8x32xf32>
    %cst_27 = arith.constant 1.000000e+00 : f32
    %110 = vector.broadcast %cst_27 : f32 to vector<8x32xf32>
    %111 = arith.addf %110, %109 : vector<8x32xf32>
    %112 = arith.divf %110, %111 : vector<8x32xf32>
    %113 = vector.extract_strided_slice %103 {offsets = [0, 32], sizes = [8, 32], strides = [1, 1]} : vector<8x96xf32> to vector<8x32xf32>
    %114 = vector.extract_strided_slice %104 {offsets = [0, 32], sizes = [8, 32], strides = [1, 1]} : vector<8x96xf32> to vector<8x32xf32>
    %115 = arith.addf %113, %114 : vector<8x32xf32>
    %116 = arith.negf %115 : vector<8x32xf32>
    %117 = math.exp %116 : vector<8x32xf32>
    %cst_28 = arith.constant 1.000000e+00 : f32
    %118 = vector.broadcast %cst_28 : f32 to vector<8x32xf32>
    %119 = arith.addf %118, %117 : vector<8x32xf32>
    %120 = arith.divf %118, %119 : vector<8x32xf32>
    %121 = vector.extract_strided_slice %103 {offsets = [0, 64], sizes = [8, 32], strides = [1, 1]} : vector<8x96xf32> to vector<8x32xf32>
    %122 = vector.extract_strided_slice %104 {offsets = [0, 64], sizes = [8, 32], strides = [1, 1]} : vector<8x96xf32> to vector<8x32xf32>
    %123 = vector.broadcast %7 : vector<1x32xf32> to vector<8x32xf32>
    %124 = arith.addf %122, %123 : vector<8x32xf32>
    %125 = arith.mulf %112, %124 : vector<8x32xf32>
    %126 = arith.addf %121, %125 : vector<8x32xf32>
    %127 = math.tanh %126 : vector<8x32xf32>
    %cst_29 = arith.constant 1.000000e+00 : f32
    %128 = vector.broadcast %cst_29 : f32 to vector<8x32xf32>
    %129 = arith.subf %128, %120 : vector<8x32xf32>
    %130 = arith.mulf %129, %127 : vector<8x32xf32>
    %131 = arith.mulf %120, %102 : vector<8x32xf32>
    %132 = arith.addf %130, %131 : vector<8x32xf32>
    %c0_30 = arith.constant 0 : index
    %c0_31 = arith.constant 0 : index
    %133 = vector.load %arg7[%c0_30, %c0_31] : memref<8x32xf32, #tpu.memory_space<vmem>>, vector<8x32xf32>
    tpu.vector_store %arg7[%c0_30, %c0_31], %132 {strides = array<i32>} : memref<8x32xf32, #tpu.memory_space<vmem>>, vector<8x32xf32>,
    return
  }
  func.func @transform_0(%arg0: i32) -> (i32, i32, i32) {
    %c0_i32 = arith.constant 0 : i32
    %c0_i32_0 = arith.constant 0 : i32
    %c0_i32_1 = arith.constant 0 : i32
    return %arg0, %c0_i32, %c0_i32_0 : i32, i32, i32
  }
  func.func @transform_1(%arg0: i32) -> (i32, i32, i32) {
    %c0_i32 = arith.constant 0 : i32
    %c0_i32_0 = arith.constant 0 : i32
    %c0_i32_1 = arith.constant 0 : i32
    return %arg0, %c0_i32, %c0_i32_0 : i32, i32, i32
  }
  func.func @transform_2(%arg0: i32) -> (i32, i32) {
    %c0_i32 = arith.constant 0 : i32
    %c0_i32_0 = arith.constant 0 : i32
    %c0_i32_1 = arith.constant 0 : i32
    return %c0_i32, %c0_i32_0 : i32, i32
  }
  func.func @transform_3(%arg0: i32) -> (i32, i32) {
    %c0_i32 = arith.constant 0 : i32
    %c0_i32_0 = arith.constant 0 : i32
    %c0_i32_1 = arith.constant 0 : i32
    return %c0_i32, %c0_i32_0 : i32, i32
  }
  func.func @transform_4(%arg0: i32) -> (i32, i32) {
    %c0_i32 = arith.constant 0 : i32
    %c0_i32_0 = arith.constant 0 : i32
    %c0_i32_1 = arith.constant 0 : i32
    return %c0_i32, %c0_i32_0 : i32, i32
  }
  func.func @transform_5(%arg0: i32) -> (i32, i32) {
    %c0_i32 = arith.constant 0 : i32
    %c0_i32_0 = arith.constant 0 : i32
    %c0_i32_1 = arith.constant 0 : i32
    return %c0_i32, %c0_i32_0 : i32, i32
  }
  func.func @transform_6(%arg0: i32) -> (i32, i32) {
    %c0_i32 = arith.constant 0 : i32
    %c0_i32_0 = arith.constant 0 : i32
    return %arg0, %c0_i32 : i32, i32
  }
}

</mosaic_0001>

<bundles_post_ra>
// kernel: _lambda_.1
= control target key start
LH: loop header
LB: loop body
LE: loop exit
PB: predicated region body
PF: predicated region fallthrough
CT: control target
= control target key end

     0   :  { %11 = vsyncpa [#allocation3], 0  ;;  %s1214_s0 = inlined_call_operand.vmem [shape: f32[2,8,32], index: 0, kind: input, shape index: {}]   ;;  %s1215_s1 = inlined_call_operand.vmem [shape: f32[2,8,32], index: 1, kind: input, shape index: {}]   ;;  %s1216_s2 = inlined_call_operand.vmem [shape: f32[32,96], index: 2, kind: input, shape index: {}]   ;;  %s1217_s3 = inlined_call_operand.vmem [shape: f32[32,96], index: 3, kind: input, shape index: {}]   ;;  %s1218_s4 = inlined_call_operand.vmem [shape: f32[1,96], index: 4, kind: input, shape index: {}]   ;;  %s1219_s5 = inlined_call_operand.vmem [shape: f32[1,32], index: 5, kind: input, shape index: {}]   ;;  %s1220_s6 = inlined_call_operand.hbm [shape: f32[16,32], index: 6, kind: output, shape index: {}]  }
   0x1   :  { %13 = vsyncpa [#allocation3 + $0x1], 0  ;;  %s1018_s21 = smov 0   ;;  %s1020_s22 = smov 0  }
   0x2   :  { %s1022_s23 = smov 0   ;;  %s1024_s24 = smov 0  }
   0x3 LB: > { %s1039_s25 = sadd.s32 4294967295, %s978_s24   ;;  %s807_s26 = sadd.s32 4294967294, %s978_s24   ;;  %s978_s24 = sphi %s1024_s24, %s1226_s24   ;;  %s974_s23 = sphi %s1022_s23, %s1225_s23   ;;  %s970_s22 = sphi %s1020_s22, %s1224_s22   ;;  %s966_s21 = sphi %s1018_s21, %s1223_s21  }
   0x4   : > { %s1043_s27 = sadd.s32 1, %s978_s24   ;;  %s162_s28 = sadd.s32 1, %s974_s23 }
   0x5   : > { %s159_s29 = ssub.s32 %s978_s24, %s1043_s27  ;;  %p172_p0 = scmp.ne.s32.totalorder %s974_s23, %s970_s22 }
   0x6   : > { %p160_p1 = scmp.eq.s32.totalorder %s159_s29, 0  ;;  %p173_p2 = scmp.eq.s32.totalorder %s1039_s25, 1 }
   0x7   : > { %p178_p3 = scmp.ne.s32.totalorder %s970_s22, %s966_s21  ;;  %p179_p4 = scmp.eq.s32.totalorder %s807_s26, 1 }
   0x8   : > { %s1054_s30 = scalar_select %p160_p1, %s974_s23, %s162_s28  }
   0x9   : > { %p1056_p5 = por %p173_p2, %p172_p0  ;;  %p1060_p6 = por %p179_p4, %p178_p3 }
   0xa   : > { %p810_p7 = scmp.ge.s32.totalorder %s978_s24, 1  ;;  %p223_p8 = scmp.lt.s32.totalorder %s978_s24, 3 }
   0xc   : > { %p224_p9 = pnand %p810_p7, %p223_p8 }
   0xd   : > { %p256_p10 = scmp.lt.s32.totalorder (!%p224_p9), %s1039_s25, 1  ;;  %s980_s17 = smov (!%p224_p9), 64  }
   0xe   : > { %227 = sbr.rel (%p224_p9) target bundleno = 2382 (0x94e), region = 44  ;;  %s982_s29 = smov (!%p224_p9), 96  }
   0xf   : > { %s253_s9 = sand.u32 (!%p224_p9), 1, %s970_s22   ;;  %s827_s11 = sshll.u32 (!%p224_p9), %s1039_s25, 3 }
  0x10   : > { %s811_s10 = sshll.u32 (!%p224_p9), %s253_s9, 3  ;;  %s731_s14 = scalar_lea.hbm (!%p224_p9), %s1220_s6, %s827_s11 }
  0x11   : > { %s255_s15 = scalar_lea.vmem (!%p224_p9), [#allocation2], %s811_s10  ;;  %s721_s18 = scalar_lea.sflag (!%p224_p9), [#allocation3], %s253_s9 }
  0x12   : > { %s936_s28 = scalar_lea.hbm (!%p224_p9), %s1220_s6, 16 }
  0x13   : > { %v269_v0 = vld [vmem:[%s1216_s2 + $0x18] sm:$0xff]  ;;  %v268_v2 = vld [vmem:[%s1216_s2 + $0x10] sm:$0xff]  ;;  %v267_v4 = vld [vmem:[%s1216_s2 + $0x8] sm:$0xff]  ;;  %s257_s26 = scalar_select %p256_p10, %s1039_s25, 1  ;;  %vm279_vm0 = vcmask 261120   ;;  %v981_v10 = vmov 0.0  }
  0x14   : > { %v273_v1 = vld [vmem:[%s1217_s3 + $0x18] sm:$0xff]  ;;  %298 = vmatpush.msra.mxu0 %v269_v0  ;;  %v272_v3 = vld [vmem:[%s1217_s3 + $0x10] sm:$0xff]  ;;  %v271_v5 = vld [vmem:[%s1217_s3 + $0x8] sm:$0xff]  ;;  %vm418_vm9 = vcmask 1042432   ;;  %vm521_vm10 = vcmask 1040384  }
  0x15   : > { %324 = vmatpush.msra.mxu1 %v273_v1  ;;  %438 = vmatpush.msra.mxu2 %v273_v1  ;;  %v872_v6 = vld [vmem:[%s1219_s5] ss:$0 sm:$0xff]  ;;  %s812_s13 = sshll.u32 %s257_s26, 3 }
  0x16   : > { %553 = vmatpush.msra.mxu3 %v273_v1  ;;  %299 = vmatpush.msra.mxu0 %v268_v2  ;;  %v266_v7 = vld [vmem:[%s1216_s2] sm:$0xff]  ;;  %s259_s16 = scalar_lea.vmem %s1214_s0, %s812_s13  ;;  %s263_s20 = scalar_lea.vmem %s1215_s1, %s812_s13 }
  0x17   : > { %325 = vmatpush.msra.mxu1 %v272_v3  ;;  %v270_v8 = vld [vmem:[%s1217_s3] sm:$0xff]  ;;  %439 = vmatpush.msra.mxu2 %v272_v3 }
  0x18   : > { %554 = vmatpush.msra.mxu3 %v272_v3  ;;  %300 = vmatpush.msra.mxu0 %v267_v4  ;;  %v264_v9 = vld [vmem:[%s259_s16] sm:$0xff]  ;;  %s733_s16 = sshll.u32 %s255_s15, 4  ;;  %s734_s16 = int_to_ptr.vmem [resolvable:$true] %s733_s16 }
  0x19   : > { %326 = vmatpush.msra.mxu1 %v271_v5  ;;  %377 = vrot.lane.b32.xlu0 %v872_v6, %s980_s17  ;;  %v265_v11 = vld [vmem:[%s263_s20] sm:$0xff] }
  0x1a   : > { %440 = vmatpush.msra.mxu2 %v271_v5  ;;  %301 = vmatpush.msra.mxu0 %v266_v7  ;;  %v873_v17 = vld [vmem:[%s1218_s4] ss:$0 sm:$0xff] }
  0x1b   : > { %327 = vmatpush.msra.mxu1 %v270_v8  ;;  %814 = vmatmul.msk.f32.vlgmr.msra.gmra.mxu0 %vm279_vm0, %v264_v9 }
  0x1c   : > { %328 = vmatmul.f32.vlgmr.msra.gmra.mxu1 %v981_v10  ;;  %441 = vmatpush.msra.mxu2 %v270_v8 }
  0x1d   : > { %555 = vmatpush.msra.mxu3 %v271_v5  ;;  %666 = vmatpush.msrb.mxu1 %v273_v1 }
  0x1f   : > { %556 = vmatpush.msra.mxu3 %v270_v8  ;;  %667 = vmatpush.msrb.mxu1 %v272_v3 }
  0x21   : > { %668 = vmatpush.msrb.mxu1 %v271_v5 }
  0x23   : > { %815 = vmatmul.msk.f32.gmra.mxu0 %vm279_vm0, %v265_v11  ;;  %669 = vmatpush.msrb.mxu1 %v270_v8 }
  0x8b   : > { %v1104_v12 = vpop.permute.xlu0 %377 }
  0x98   : > { %v303_v16 = vpop.f32.mrf.mxu0 }
  0x99   : > { %v329_v13 = vpop.f32.mrf.mxu1  ;;  %v1111_v18 = vadd.f32 %v873_v17, %v303_v16 }
  0x9a   : > { %v380_v14 = vadd.f32 %v1104_v12, %v329_v13  ;;  %v333_v19 = vrot.slane %v329_v13, 3 }
  0x9c   : > { %v382_v15 = vrot.slane %v380_v14, 3  ;;  %v335_v20 = vadd.f32 %v333_v19, %v1111_v18 }
  0x9e   : > { %383 = vrot.lane.b32.xlu0 %v382_v15, %s980_s17  ;;  %v816_v22 = vmul.f32 -1.442695, %v335_v20 }
  0xa0   : > { %v306_v21 = vpop.f32.mrf.mxu0  ;;  %874 = vpow2.f32 %v816_v22 }
  0xa1   : > { %v1114_v23 = vadd.f32 %v873_v17, %v306_v21 }
  0xa3   : > { %v336_v24 = vadd.f32 %v333_v19, %v1114_v23 }
  0xa5   : > { %v817_v25 = vmul.f32 -1.442695, %v336_v24 }
  0xa6   : > { %v875_v26 = vpop.eup %874 }
  0xa7   : > { %876 = vpow2.f32 %v817_v25  ;;  %v343_v27 = vadd.f32 1.0, %v875_v26 }
  0xa9   : > { %878 = vrcp.f32 %v343_v27  ;;  %v356_v38 = vand.u32 2147483648, %v343_v27  ;;  %vm350_vm2 = vweird.f32 %v343_v27  ;;  %v354_v39 = vand.u32 2147483647, %v343_v27 }
  0xab   : > { %v357_v42 = vor.u32 1.1754944e-38, %v356_v38  ;;  %vm355_vm4 = vcmp.eq.f32.partialorder %v354_v39, 8.507059e+37 }
  0xad   : > { %v877_v28 = vpop.eup %876 }
  0xae   : > { %v344_v29 = vadd.f32 1.0, %v877_v28 }
  0xaf   : > { %v879_v30 = vpop.eup %878 }
  0xb0   : > { %880 = vrcp.f32 %v344_v29  ;;  %v346_v31 = vmul.f32 %v879_v30, %v343_v27  ;;  %vm351_vm1 = vweird.f32 %v879_v30  ;;  %v371_v47 = vand.u32 2147483648, %v344_v29 }
  0xb1   : > { %vm352_vm3 = vmor %vm350_vm2, %vm351_vm1  ;;  %vm365_vm6 = vweird.f32 %v344_v29  ;;  %v369_v48 = vand.u32 2147483647, %v344_v29 }
  0xb2   : > { %v347_v32 = vsub.f32 1.0, %v346_v31  ;;  %v372_v50 = vor.u32 1.1754944e-38, %v371_v47 }
  0xb3   : > { %vm370_vm8 = vcmp.eq.f32.partialorder %v369_v48, 8.507059e+37 }
  0xb4   : > { %v348_v35 = vmul.f32 %v879_v30, %v347_v32 }
  0xb6   : > { %v881_v33 = vpop.eup %880  ;;  %v349_v37 = vadd.f32 %v879_v30, %v348_v35 }
  0xb7   : > { %v361_v34 = vmul.f32 %v881_v33, %v344_v29  ;;  %vm366_vm5 = vweird.f32 %v881_v33 }
  0xb8   : > { %v353_v41 = vsel %vm352_vm3, %v879_v30, %v349_v37  ;;  %vm367_vm7 = vmor %vm365_vm6, %vm366_vm5 }
  0xb9   : > { %v362_v36 = vsub.f32 1.0, %v361_v34  ;;  %v358_v44 = vsel %vm355_vm4, %v357_v42, %v353_v41  ;;  %vm533_vm4 = vcmask 1041408  }
  0xba   : > { %v400_v60 = vsub.f32 1.0, %v358_v44  ;;  %v412_v62 = vmul.f32 0.0, %v358_v44 }
  0xbb   : > { %v363_v40 = vmul.f32 %v881_v33, %v362_v36 }
  0xbd   : > { %v364_v45 = vadd.f32 %v881_v33, %v363_v40 }
  0xbf   : > { %v368_v49 = vsel %vm367_vm7, %v881_v33, %v364_v45 }
  0xc0   : > { %v373_v51 = vsel %vm370_vm8, %v372_v50, %v368_v49 }
  0xc1   : > { %v401_v63 = vsub.f32 1.0, %v373_v51  ;;  %v413_v2 = vmul.f32 0.0, %v373_v51 }
 0x110   : > { %v384_v43 = vpop.permute.xlu0 %383 }
 0x111   : > { %v386_v46 = vmul.f32 %v384_v43, %v358_v44  ;;  %v387_v52 = vmul.f32 %v384_v43, %v373_v51 }
 0x113   : > { %390 = vrot.lane.b32.xlu1 %v386_v46, %s980_s17 }
 0x11b   : > { %392 = vrot.lane.b32.xlu1 %v387_v52, %s980_s17 }
 0x185   : > { %v391_v53 = vpop.permute.xlu1 %390 }
 0x186   : > { %v396_v54 = vadd.f32 %v391_v53, %v1111_v18 }
 0x188   : > { %882 = vtanh.f32 %v396_v54 }
 0x18d   : > { %v393_v55 = vpop.permute.xlu1 %392 }
 0x18e   : > { %v883_v56 = vpop.eup %882  ;;  %v397_v57 = vadd.f32 %v393_v55, %v1114_v23 }
 0x18f   : > { %404 = vrot.lane.b32.xlu2 %v883_v56, %s982_s29 }
 0x190   : > { %884 = vtanh.f32 %v397_v57 }
 0x196   : > { %v885_v58 = vpop.eup %884 }
 0x197   : > { %406 = vrot.lane.b32.xlu2 %v885_v58, %s982_s29 }
 0x1e9   : > { %v405_v59 = vpop.permute.xlu2 %404 }
 0x1ea   : > { %v410_v61 = vmul.f32 %v405_v59, %v400_v60 }
 0x1ec   : > { %v1123_v1 = vadd.f32 %v412_v62, %v410_v61 }
 0x1ee   : > { %v419_v5 = vrot.slane %v1123_v1, 5  ;;  %v522_v6 = vrot.slane %v1123_v1, 7 }
 0x1f1   : > { %v407_v0 = vpop.permute.xlu2 %406 }
 0x1f2   : > { %v411_v3 = vmul.f32 %v407_v0, %v401_v63 }
 0x1f4   : > { %v415_v4 = vadd.f32 %v413_v2, %v411_v3 }
 0x1f6   : > { %v420_v7 = vrot.slane %v415_v4, 5  ;;  %v523_v8 = vrot.slane %v415_v4, 7 }
 0x1f8   : > { %v421_v9 = vsel %vm418_vm9, %v419_v5, %v420_v7  ;;  %v1130_v10 = vsel %vm521_vm10, %v522_v6, %v523_v8 }
 0x1f9   : > { %422 = vrot.lane.b32.xlu0 %v421_v9, %s982_s29 }
 0x26b   : > { %v423_v11 = vpop.permute.xlu0 %422 }
 0x26c   : > { %818 = vmatmul.msk.f32.vlgmr.msra.gmra.mxu2 %vm279_vm0, %v423_v11 }
 0x2ef   : > { %v443_v13 = vpop.f32.mrf.mxu2 }
 0x2f0   : > { %v489_v14 = vadd.f32 %v443_v13, %v1104_v12  ;;  %v447_v16 = vrot.slane %v443_v13, 2 }
 0x2f2   : > { %v491_v15 = vrot.slane %v489_v14, 2  ;;  %v449_v17 = vadd.f32 %v447_v16, %v1111_v18  ;;  %v450_v19 = vadd.f32 %v447_v16, %v1114_v23 }
 0x2f4   : > { %492 = vrot.lane.b32.xlu1 %v491_v15, %s980_s17  ;;  %v819_v20 = vmul.f32 -1.442695, %v449_v17  ;;  %v820_v21 = vmul.f32 -1.442695, %v450_v19 }
 0x2f6   : > { %886 = vpow2.f32 %v819_v20 }
 0x2f7   : > { %888 = vpow2.f32 %v820_v21 }
 0x2fc   : > { %v887_v22 = vpop.eup %886 }
 0x2fd   : > { %v889_v24 = vpop.eup %888  ;;  %v457_v25 = vadd.f32 1.0, %v887_v22 }
 0x2fe   : > { %v458_v26 = vadd.f32 1.0, %v889_v24 }
 0x2ff   : > { %890 = vrcp.f32 %v457_v25  ;;  %vm464_vm13 = vweird.f32 %v457_v25  ;;  %v470_v37 = vand.u32 2147483648, %v457_v25  ;;  %v468_v39 = vand.u32 2147483647, %v457_v25 }
 0x300   : > { %892 = vrcp.f32 %v458_v26  ;;  %v485_v38 = vand.u32 2147483648, %v458_v26  ;;  %vm479_vm15 = vweird.f32 %v458_v26  ;;  %v483_v40 = vand.u32 2147483647, %v458_v26 }
 0x301   : > { %v471_v43 = vor.u32 1.1754944e-38, %v470_v37  ;;  %vm469_vm2 = vcmp.eq.f32.partialorder %v468_v39, 8.507059e+37 }
 0x302   : > { %v486_v44 = vor.u32 1.1754944e-38, %v485_v38  ;;  %vm484_vm3 = vcmp.eq.f32.partialorder %v483_v40, 8.507059e+37 }
 0x305   : > { %v891_v27 = vpop.eup %890 }
 0x306   : > { %v893_v28 = vpop.eup %892  ;;  %v460_v29 = vmul.f32 %v891_v27, %v457_v25  ;;  %vm465_vm11 = vweird.f32 %v891_v27 }
 0x307   : > { %v475_v30 = vmul.f32 %v893_v28, %v458_v26  ;;  %vm480_vm12 = vweird.f32 %v893_v28  ;;  %vm466_vm14 = vmor %vm464_vm13, %vm465_vm11 }
 0x308   : > { %v461_v31 = vsub.f32 1.0, %v460_v29  ;;  %vm481_vm1 = vmor %vm479_vm15, %vm480_vm12 }
 0x309   : > { %v476_v32 = vsub.f32 1.0, %v475_v30 }
 0x30a   : > { %v462_v33 = vmul.f32 %v891_v27, %v461_v31 }
 0x30b   : > { %v477_v34 = vmul.f32 %v893_v28, %v476_v32 }
 0x30c   : > { %v463_v35 = vadd.f32 %v891_v27, %v462_v33 }
 0x30d   : > { %v478_v36 = vadd.f32 %v893_v28, %v477_v34 }
 0x30e   : > { %v467_v41 = vsel %vm466_vm14, %v891_v27, %v463_v35 }
 0x30f   : > { %v482_v42 = vsel %vm481_vm1, %v893_v28, %v478_v36  ;;  %v472_v46 = vsel %vm469_vm2, %v471_v43, %v467_v41 }
 0x310   : > { %v487_v47 = vsel %vm484_vm3, %v486_v44, %v482_v42  ;;  %v509_v56 = vsub.f32 1.0, %v472_v46  ;;  %v527_v60 = vmul.f32 %v522_v6, %v472_v46 }
 0x311   : > { %v510_v57 = vsub.f32 1.0, %v487_v47  ;;  %v528_v62 = vmul.f32 %v1130_v10, %v487_v47 }
 0x366   : > { %v493_v45 = vpop.permute.xlu1 %492 }
 0x367   : > { %v495_v48 = vmul.f32 %v493_v45, %v472_v46  ;;  %v496_v49 = vmul.f32 %v493_v45, %v487_v47 }
 0x369   : > { %501 = vrot.lane.b32.xlu0 %v496_v49, %s980_s17  ;;  %499 = vrot.lane.b32.xlu2 %v495_v48, %s980_s17 }
 0x3c3   : > { %v500_v50 = vpop.permute.xlu2 %499 }
 0x3c4   : > { %v505_v51 = vadd.f32 %v500_v50, %v1111_v18 }
 0x3c6   : > { %894 = vtanh.f32 %v505_v51 }
 0x3cc   : > { %v895_v52 = vpop.eup %894 }
 0x3cd   : > { %513 = vrot.lane.b32.xlu1 %v895_v52, %s982_s29 }
 0x3db   : > { %v502_v53 = vpop.permute.xlu0 %501 }
 0x3dc   : > { %v506_v54 = vadd.f32 %v502_v53, %v1114_v23 }
 0x3de   : > { %896 = vtanh.f32 %v506_v54 }
 0x3e4   : > { %v897_v55 = vpop.eup %896 }
 0x3e5   : > { %515 = vrot.lane.b32.xlu2 %v897_v55, %s982_s29 }
 0x43f   : > { %v514_v58 = vpop.permute.xlu1 %513  ;;  %v516_v59 = vpop.permute.xlu2 %515 }
 0x440   : > { %v519_v61 = vmul.f32 %v514_v58, %v509_v56  ;;  %v520_v63 = vmul.f32 %v516_v59, %v510_v57 }
 0x442   : > { %v1147_v0 = vadd.f32 %v527_v60, %v519_v61  ;;  %v530_v2 = vadd.f32 %v528_v62, %v520_v63 }
 0x444   : > { %v534_v3 = vrot.slane %v1147_v0, 6  ;;  %v636_v4 = vrot.slane %v1147_v0, 7  ;;  %v535_v5 = vrot.slane %v530_v2, 6  ;;  %v637_v7 = vrot.slane %v530_v2, 7 }
 0x446   : > { %v536_v8 = vsel %vm533_vm4, %v534_v3, %v535_v5  ;;  %v1154_v1 = vsel %vm521_vm10, %v636_v4, %v637_v7 }
 0x447   : > { %537 = vrot.lane.b32.xlu0 %v536_v8, %s982_s29 }
 0x4b9   : > { %v538_v6 = vpop.permute.xlu0 %537 }
 0x4ba   : > { %821 = vmatmul.msk.f32.vlgmr.msra.gmra.mxu3 %vm279_vm0, %v538_v6 }
 0x53d   : > { %v558_v9 = vpop.f32.mrf.mxu3 }
 0x53e   : > { %v604_v10 = vadd.f32 %v558_v9, %v1104_v12  ;;  %v562_v13 = vrot.slane %v558_v9, 1 }
 0x540   : > { %v606_v11 = vrot.slane %v604_v10, 1  ;;  %v564_v14 = vadd.f32 %v562_v13, %v1111_v18  ;;  %v565_v15 = vadd.f32 %v562_v13, %v1114_v23 }
 0x542   : > { %607 = vrot.lane.b32.xlu1 %v606_v11, %s980_s17  ;;  %v822_v16 = vmul.f32 -1.442695, %v564_v14  ;;  %v823_v17 = vmul.f32 -1.442695, %v565_v15 }
 0x544   : > { %898 = vpow2.f32 %v822_v16 }
 0x545   : > { %900 = vpow2.f32 %v823_v17 }
 0x54a   : > { %v899_v19 = vpop.eup %898 }
 0x54b   : > { %v901_v20 = vpop.eup %900  ;;  %v572_v21 = vadd.f32 1.0, %v899_v19 }
 0x54c   : > { %v573_v22 = vadd.f32 1.0, %v901_v20 }
 0x54d   : > { %902 = vrcp.f32 %v572_v21  ;;  %vm579_vm7 = vweird.f32 %v572_v21  ;;  %v585_v34 = vand.u32 2147483648, %v572_v21  ;;  %v583_v36 = vand.u32 2147483647, %v572_v21 }
 0x54e   : > { %904 = vrcp.f32 %v573_v22  ;;  %v600_v35 = vand.u32 2147483648, %v573_v22  ;;  %vm594_vm9 = vweird.f32 %v573_v22  ;;  %v598_v37 = vand.u32 2147483647, %v573_v22 }
 0x54f   : > { %v586_v40 = vor.u32 1.1754944e-38, %v585_v34  ;;  %vm584_vm12 = vcmp.eq.f32.partialorder %v583_v36, 8.507059e+37 }
 0x550   : > { %v601_v41 = vor.u32 1.1754944e-38, %v600_v35  ;;  %vm599_vm13 = vcmp.eq.f32.partialorder %v598_v37, 8.507059e+37 }
 0x553   : > { %v903_v24 = vpop.eup %902 }
 0x554   : > { %v905_v25 = vpop.eup %904  ;;  %v575_v26 = vmul.f32 %v903_v24, %v572_v21  ;;  %vm580_vm5 = vweird.f32 %v903_v24 }
 0x555   : > { %v590_v27 = vmul.f32 %v905_v25, %v573_v22  ;;  %vm595_vm6 = vweird.f32 %v905_v25  ;;  %vm581_vm8 = vmor %vm579_vm7, %vm580_vm5 }
 0x556   : > { %v576_v28 = vsub.f32 1.0, %v575_v26  ;;  %vm596_vm11 = vmor %vm594_vm9, %vm595_vm6 }
 0x557   : > { %v591_v29 = vsub.f32 1.0, %v590_v27 }
 0x558   : > { %v577_v30 = vmul.f32 %v903_v24, %v576_v28 }
 0x559   : > { %v592_v31 = vmul.f32 %v905_v25, %v591_v29 }
 0x55a   : > { %v578_v32 = vadd.f32 %v903_v24, %v577_v30 }
 0x55b   : > { %v593_v33 = vadd.f32 %v905_v25, %v592_v31 }
 0x55c   : > { %v582_v38 = vsel %vm581_vm8, %v903_v24, %v578_v32 }
 0x55d   : > { %v597_v39 = vsel %vm596_vm11, %v905_v25, %v593_v33  ;;  %v587_v43 = vsel %vm584_vm12, %v586_v40, %v582_v38 }
 0x55e   : > { %v602_v44 = vsel %vm599_vm13, %v601_v41, %v597_v39  ;;  %v624_v53 = vsub.f32 1.0, %v587_v43  ;;  %v641_v57 = vmul.f32 %v636_v4, %v587_v43 }
 0x55f   : > { %v625_v54 = vsub.f32 1.0, %v602_v44 }
 0x5b4   : > { %v608_v42 = vpop.permute.xlu1 %607 }
 0x5b5   : > { %v610_v45 = vmul.f32 %v608_v42, %v587_v43  ;;  %v611_v46 = vmul.f32 %v608_v42, %v602_v44 }
 0x5b7   : > { %616 = vrot.lane.b32.xlu0 %v611_v46, %s980_s17  ;;  %614 = vrot.lane.b32.xlu2 %v610_v45, %s980_s17 }
 0x611   : > { %v615_v47 = vpop.permute.xlu2 %614 }
 0x612   : > { %v620_v48 = vadd.f32 %v615_v47, %v1111_v18  ;;  %v642_v18 = vmul.f32 %v1154_v1, %v602_v44 }
 0x614   : > { %906 = vtanh.f32 %v620_v48 }
 0x61a   : > { %v907_v49 = vpop.eup %906 }
 0x61b   : > { %628 = vrot.lane.b32.xlu1 %v907_v49, %s982_s29 }
 0x629   : > { %v617_v50 = vpop.permute.xlu0 %616 }
 0x62a   : > { %v621_v51 = vadd.f32 %v617_v50, %v1114_v23 }
 0x62c   : > { %908 = vtanh.f32 %v621_v51 }
 0x632   : > { %v909_v52 = vpop.eup %908 }
 0x633   : > { %630 = vrot.lane.b32.xlu2 %v909_v52, %s982_s29 }
 0x68d   : > { %v629_v55 = vpop.permute.xlu1 %628  ;;  %v631_v56 = vpop.permute.xlu2 %630 }
 0x68e   : > { %v634_v58 = vmul.f32 %v629_v55, %v624_v53  ;;  %v635_v59 = vmul.f32 %v631_v56, %v625_v54 }
 0x690   : > { %v643_v60 = vadd.f32 %v641_v57, %v634_v58  ;;  %v644_v61 = vadd.f32 %v642_v18, %v635_v59 }
 0x692   : > { %v647_v62 = vrot.slane %v643_v60, 7  ;;  %v648_v63 = vrot.slane %v644_v61, 7 }
 0x694   : > { %v649_v2 = vsel %vm521_vm10, %v647_v62, %v648_v63 }
 0x695   : > { %650 = vrot.lane.b32.xlu0 %v649_v2, %s982_s29 }
 0x707   : > { %v651_v3 = vpop.permute.xlu0 %650 }
 0x708   : > { %824 = vmatmul.msk.f32.vlgmr.msrb.gmra.mxu1 %vm279_vm0, %v651_v3 }
 0x785   : > { %v671_v5 = vpop.f32.mrf.mxu1 }
 0x786   : > { %v694_v7 = vadd.f32 %v671_v5, %v1104_v12  ;;  %v674_v0 = vadd.f32 %v671_v5, %v1114_v23 }
 0x788   : > { %696 = vrot.lane.b32.xlu1 %v694_v7, %s980_s17  ;;  %v825_v4 = vmul.f32 -1.442695, %v674_v0 }
 0x78a   : > { %910 = vpow2.f32 %v825_v4 }
 0x790   : > { %v911_v8 = vpop.eup %910 }
 0x791   : > { %v678_v1 = vadd.f32 1.0, %v911_v8 }
 0x793   : > { %912 = vrcp.f32 %v678_v1  ;;  %v690_v14 = vand.u32 2147483648, %v678_v1  ;;  %vm684_vm14 = vweird.f32 %v678_v1  ;;  %v688_v15 = vand.u32 2147483647, %v678_v1 }
 0x795   : > { %v691_v16 = vor.u32 1.1754944e-38, %v690_v14  ;;  %vm689_vm1 = vcmp.eq.f32.partialorder %v688_v15, 8.507059e+37 }
 0x799   : > { %v913_v6 = vpop.eup %912 }
 0x79a   : > { %v680_v9 = vmul.f32 %v913_v6, %v678_v1  ;;  %vm685_vm10 = vweird.f32 %v913_v6 }
 0x79b   : > { %vm686_vm15 = vmor %vm684_vm14, %vm685_vm10 }
 0x79c   : > { %v681_v10 = vsub.f32 1.0, %v680_v9 }
 0x79e   : > { %v682_v11 = vmul.f32 %v913_v6, %v681_v10 }
 0x7a0   : > { %v683_v13 = vadd.f32 %v913_v6, %v682_v11 }
 0x7a2   : > { %v687_v12 = vsel %vm686_vm15, %v913_v6, %v683_v13 }
 0x7a3   : > { %v692_v19 = vsel %vm689_vm1, %v691_v16, %v687_v12 }
 0x7a4   : > { %v706_v25 = vsub.f32 1.0, %v692_v19  ;;  %v713_v27 = vmul.f32 %v692_v19, %v649_v2 }
 0x7fa   : > { %v697_v17 = vpop.permute.xlu1 %696 }
 0x7fb   : > { %v699_v20 = vmul.f32 %v697_v17, %v692_v19 }
 0x7fd   : > { %701 = vrot.lane.b32.xlu2 %v699_v20, %s980_s17  ;;  %s735_s17 = sshll.u32 %s731_s14, 4  ;;  %s736_s17 = int_to_ptr.hbm [resolvable:$true] %s735_s17 }
 0x7fe   : > { %s930_s19 = sshra.s32 %s736_s17, 4  ;;  %s931_s19 = int_to_ptr.hbm [resolvable:$true] %s930_s19 }
 0x7ff   : > { %s932_s20 = scalar_lea.hbm %s931_s19, 8  ;;  %p937_p0 = scmp.lt.s32.totalorder %s931_s19, %s1220_s6 }
 0x800   : > { %p933_p11 = scmp.ne.s32.totalorder %s931_s19, %s932_s20  ;;  %p938_p1 = scmp.lt.s32.totalorder %s936_s28, %s932_s20 }
 0x802   : > { %p934_p12 = pnand %p933_p11, %p1056_p5  ;;  %p939_p2 = por %p938_p1, %p937_p0 }
 0x804   : > { %p935_p13 = pneg %p934_p12 }
 0x806   : > { %p940_p3 = pnand %p939_p2, %p935_p13 }
 0x857   : > { %v702_v21 = vpop.permute.xlu2 %701 }
 0x858   : > { %v704_v22 = vadd.f32 %v702_v21, %v1114_v23 }
 0x85a   : > { %914 = vtanh.f32 %v704_v22 }
 0x860   : > { %v915_v24 = vpop.eup %914 }
 0x861   : > { %708 = vrot.lane.b32.xlu0 %v915_v24, %s982_s29 }
 0x8d3   : > { %v709_v26 = vpop.permute.xlu0 %708 }
 0x8d4   : > { %v711_v28 = vmul.f32 %v709_v26, %v706_v25 }
 0x8d6   : > { %v714_v29 = vadd.f32 %v713_v27, %v711_v28 }
 0x8d8   : > { %716 = vrot.lane.b32.xlu1 %v714_v29, %s982_s29 }
 0x94a   : > { %v717_v23 = vpop.permute.xlu1 %716 }
 0x94b   : > { %719 = vst.msk [vmem:[%s255_s15] sm:$0xff] %vm279_vm0, %v717_v23 }
 0x94c   : > { %943 = shalt.err (!%p940_p3)
}
 0x94d   : > { %830 = dma.vmem_to_hbm [thread:$0]  (%p1056_p5), %s734_s16, 128, %s736_s17, %s721_s18  }
 0x94e PF: > { %p836_p4 = scmp.ge.s32.totalorder %s978_s24, 2  ;;  %s747_s9 = sand.u32 1, %s966_s21  }
 0x94f   : > { %s748_s11 = scalar_lea.sflag [#allocation3], %s747_s9 }
 0x950   : > { %p833_p7 = pnand %p836_p4, %p1060_p6 }
 0x952   : > { %p834_p8 = pneg %p833_p7 }
 0x954   : > { %961 = dma.done.wait (%p834_p8), %s748_s11, 128  }
 0x955   : > { %963 = vsyncadd (%p834_p8), %s748_s11, 4294967168  ;;  %p16_p9 = scmp.ge.s32.totalorder %s1043_s27, 4   ;;  %s1223_s21 = smov %s970_s22 }
 0x956   : > { %s1224_s22 = smov %s974_s23  ;;  %s1225_s23 = smov %s1054_s30 }
 0x957   : > { %s1226_s24 = smov %s1043_s27  ;;  %18 = sbr.rel (!%p16_p9) target bundleno = 3 (0x3), region = 82 }
 0x95c   :  { %754 = vsyncpa [#allocation3], 1 }
 0x95d   :  { %756 = vsyncpa [#allocation3 + $0x1], 1 }

</bundles_post_ra>
